<compile_context>
chip_gen: v7x
topology: tpu7x:2x2x1
jax: 0.10.0
libtpu: 0.0.40
codegen_flags: <defaults>
</compile_context>

<pallas_src>
import jax
import jax.numpy as jnp
from jax.experimental import pallas as pl
from jax.experimental.pallas import tpu as pltpu

_LANES = 128
_VEC_ROWS = 16  # packed per-feature table, padded to a sublane-friendly row count

# Row layout of the packed per-feature vector table (f32, shape (_VEC_ROWS, 128)).
_ROW_B1, _ROW_S1, _ROW_T1 = 0, 1, 2
_ROW_B2, _ROW_S2, _ROW_T2 = 3, 4, 5
_ROW_B3, _ROW_S3, _ROW_T3 = 6, 7, 8
_ROW_WO, _ROW_BO = 9, 10          # output weight row, output bias (one-hot, lane 0)
_ROW_K64, _ROW_K32 = 11, 12       # residual lane masks


def _mlp_kernel(x_ref, w1_ref, w23_ref, vec_ref, out_ref):
    f32 = jnp.float32
    w_dtype = w1_ref.dtype

    x = x_ref[...]  # (TILE_B, D) in the matmul dtype (bf16 or f32)

    # Packed per-feature vectors (all f32, shape (1, 128); static sublane slices).
    b1 = vec_ref[_ROW_B1:_ROW_B1 + 1, :]
    s1 = vec_ref[_ROW_S1:_ROW_S1 + 1, :]
    t1 = vec_ref[_ROW_T1:_ROW_T1 + 1, :]
    b2 = vec_ref[_ROW_B2:_ROW_B2 + 1, :]
    s2 = vec_ref[_ROW_S2:_ROW_S2 + 1, :]
    t2 = vec_ref[_ROW_T2:_ROW_T2 + 1, :]
    b3 = vec_ref[_ROW_B3:_ROW_B3 + 1, :]
    s3 = vec_ref[_ROW_S3:_ROW_S3 + 1, :]
    t3 = vec_ref[_ROW_T3:_ROW_T3 + 1, :]
    wo = vec_ref[_ROW_WO:_ROW_WO + 1, :]      # Linear(32,1) weight, padded with 0
    bo1 = vec_ref[_ROW_BO:_ROW_BO + 1, :]     # bias bo at lane 0, 0 elsewhere
    keep64 = vec_ref[_ROW_K64:_ROW_K64 + 1, :]
    keep32 = vec_ref[_ROW_K32:_ROW_K32 + 1, :]

    # layer1: Linear(D, 128) -> ReLU -> folded BatchNorm1d(128); dropout1 = id.
    h1 = jnp.dot(x, w1_ref[...], preferred_element_type=f32) + b1
    h1 = jnp.maximum(h1, 0.0) * s1 + t1

    # layer2: Linear(128, 64) zero-padded to 128 output lanes; dropout2 = id.
    h2 = jnp.dot(h1.astype(w_dtype), w23_ref[0], preferred_element_type=f32) + b2
    h2 = jnp.maximum(h2, 0.0) * s2 + t2
    # residual: x2 = x2 + x1[:, :64]  (full-width masked add; padded lanes stay 0)
    h2 = h2 + h1 * keep64

    # layer3: Linear(64, 32) zero-padded to 128x128; dropout3 = id.
    h3 = jnp.dot(h2.astype(w_dtype), w23_ref[1], preferred_element_type=f32) + b3
    h3 = jnp.maximum(h3, 0.0) * s3 + t3
    # residual: x3 = x3 + x2[:, :32]
    h3 = h3 + h2 * keep32

    # output: Linear(32, 1) as VPU multiply + lane (XLU) reduction; the bias is
    # folded in via the one-hot bo row so the (TILE_B, 1) column comes out
    # directly -> narrow, unpadded store.
    out = jnp.sum(h3 * wo + bo1, axis=-1, keepdims=True)
    out_ref[...] = out.astype(out_ref.dtype)


def prepare_params(params, *, dtype=jnp.bfloat16, eps=1e-5):
    """One-time fold/pack of the PyTorch parameters (call at load time, not per step).

    Returns a dict with:
      w1  : (input_dim, 128)  layer1 weight, transposed, in `dtype`
      w23 : (2, 128, 128)     layer2 / layer3 weights, transposed and
                              zero-padded to 128x128, in `dtype`
      vec : (16, 128) f32     packed bias / BN scale / BN shift / output weight
                              / output bias / residual-mask table
    """
    def bn_fold(g, b, m, v):
        s = g / jnp.sqrt(v + eps)
        t = b - m * s
        return s, t

    s1, t1 = bn_fold(params["bn1_g"], params["bn1_b"], params["bn1_m"], params["bn1_v"])
    s2, t2 = bn_fold(params["bn2_g"], params["bn2_b"], params["bn2_m"], params["bn2_v"])
    s3, t3 = bn_fold(params["bn3_g"], params["bn3_b"], params["bn3_m"], params["bn3_v"])

    def pad_lane(v, fill=0.0):
        return jnp.pad(v, (0, _LANES - v.shape[0]), constant_values=fill)

    lane = jnp.arange(_LANES)
    vec = jnp.zeros((_VEC_ROWS, _LANES), jnp.float32)
    vec = vec.at[_ROW_B1].set(params["b1"])
    vec = vec.at[_ROW_S1].set(s1)
    vec = vec.at[_ROW_T1].set(t1)
    vec = vec.at[_ROW_B2].set(pad_lane(params["b2"]))
    vec = vec.at[_ROW_S2].set(pad_lane(s2, 1.0))   # padded lanes: relu(0) * 1 + 0 = 0
    vec = vec.at[_ROW_T2].set(pad_lane(t2))
    vec = vec.at[_ROW_B3].set(pad_lane(params["b3"]))
    vec = vec.at[_ROW_S3].set(pad_lane(s3, 1.0))
    vec = vec.at[_ROW_T3].set(pad_lane(t3))
    vec = vec.at[_ROW_WO].set(pad_lane(params["wo"].reshape(-1)))
    vec = vec.at[_ROW_BO, 0].set(params["bo"][0])
    vec = vec.at[_ROW_K64].set((lane < 64).astype(jnp.float32))
    vec = vec.at[_ROW_K32].set((lane < 32).astype(jnp.float32))

    def pad_w(w_t):  # w_t: (in, out) -> zero-padded (128, 128)
        return jnp.pad(
            w_t, ((0, _LANES - w_t.shape[0]), (0, _LANES - w_t.shape[1])))

    w1 = params["w1"].T.astype(dtype)                               # (D, 128)
    w23 = jnp.stack([pad_w(params["w2"].T), pad_w(params["w3"].T)]
                    ).astype(dtype)                                 # (2, 128, 128)

    return {"w1": w1, "w23": w23, "vec": vec}


def _round_up(n, m):
    return ((n + m - 1) // m) * m


def _vmem_budget_bytes():
    """Conservative per-core VMEM budget for tile selection (trace-time)."""
    try:
        cap = int(pltpu.get_tpu_info().vmem_capacity_bytes)
    except Exception:
        cap = 64 * 1024 * 1024  # smallest per-core VMEM (v7x) as the fallback
    return max(16 * 1024 * 1024, int(cap * 0.45))


def _forward_impl(x, w1, w23, vec):
    B, D = x.shape
    dtype = w1.dtype
    x = x.astype(dtype)
    x_bytes = jnp.dtype(dtype).itemsize

    param_bytes = (w1.size * w1.dtype.itemsize
                   + w23.size * w23.dtype.itemsize
                   + vec.size * vec.dtype.itemsize)

    budget = _vmem_budget_bytes()
    # Streamed bytes per batch row (x row in + f32 out column), double-buffered.
    stream_per_row = D * x_bytes + 4
    # Resident params counted double-buffered (conservative).
    # TODO(synk): single-buffer the constant w1/w23/vec blocks via
    # pipeline_mode=pl.Buffered(1) to reclaim half of this on v7x.
    resident = 2 * param_bytes

    tile_b = 4096
    while tile_b > 64 and resident + 2 * tile_b * stream_per_row > budget:
        tile_b //= 2
    tile_b = max(8, min(tile_b, _round_up(B, 8)))
    # v7x has 2 TensorCores sharing the ("parallel",) grid axis: guarantee at
    # least two grid steps whenever the batch allows it.
    if tile_b >= B and B > 8:
        tile_b = max(8, _round_up((B + 1) // 2, 8))

    grid = pl.cdiv(B, tile_b)

    need = resident + 2 * tile_b * stream_per_row
    vmem_limit = int(max(16 * 1024 * 1024, min(2 * need, budget)))

    cost = pl.CostEstimate(
        flops=2 * B * (D * _LANES + 2 * _LANES * _LANES) + 2 * B * _LANES,
        transcendentals=0,
        bytes_accessed=B * D * x_bytes + B * 4 + param_bytes,
    )

    return pl.pallas_call(
        _mlp_kernel,
        out_shape=jax.ShapeDtypeStruct((B, 1), jnp.float32),
        grid=(grid,),
        in_specs=[
            pl.BlockSpec((tile_b, D), lambda i: (i, 0)),             # streamed x
            pl.BlockSpec((D, _LANES), lambda i: (0, 0)),             # resident w1
            pl.BlockSpec((2, _LANES, _LANES), lambda i: (0, 0, 0)),  # resident w2/w3
            pl.BlockSpec((_VEC_ROWS, _LANES), lambda i: (0, 0)),     # packed vectors
        ],
        out_specs=pl.BlockSpec((tile_b, 1), lambda i: (i, 0)),       # narrow output
        compiler_params=pltpu.CompilerParams(
            dimension_semantics=("parallel",),
            vmem_limit_bytes=vmem_limit,
        ),
        cost_estimate=cost,
    )(x, w1, w23, vec)


@jax.jit
def neural_network_forward(x, prepared):
    """Forward pass. `prepared` is the output of prepare_params (hoisted glue)."""
    return _forward_impl(x, prepared["w1"], prepared["w23"], prepared["vec"])


def init_params(key, input_dim):
    """Deterministic synthetic parameters matching NeuralNetwork(__init__) shapes."""
    ks = jax.random.split(key, 8)

    def lin(k, out_f, in_f):
        kw, kb = jax.random.split(k)
        bound = 1.0 / jnp.sqrt(in_f)
        w = jax.random.uniform(kw, (out_f, in_f), jnp.float32, -bound, bound)
        b = jax.random.uniform(kb, (out_f,), jnp.float32, -bound, bound)
        return w, b

    w1, b1 = lin(ks[0], 128, input_dim)
    w2, b2 = lin(ks[1], 64, 128)
    w3, b3 = lin(ks[2], 32, 64)
    wo, bo = lin(ks[3], 1, 32)

    def bn(k, n):
        kg, kb, km, kv = jax.random.split(k, 4)
        gamma = 1.0 + 0.1 * jax.random.normal(kg, (n,), jnp.float32)
        beta = 0.1 * jax.random.normal(kb, (n,), jnp.float32)
        mean = 0.1 * jax.random.normal(km, (n,), jnp.float32)
        var = jnp.abs(1.0 + 0.1 * jax.random.normal(kv, (n,), jnp.float32))
        return gamma, beta, mean, var

    g1, be1, m1, v1 = bn(ks[4], 128)
    g2, be2, m2, v2 = bn(ks[5], 64)
    g3, be3, m3, v3 = bn(ks[6], 32)

    return dict(
        w1=w1, b1=b1, w2=w2, b2=b2, w3=w3, b3=b3, wo=wo, bo=bo,
        bn1_g=g1, bn1_b=be1, bn1_m=m1, bn1_v=v1,
        bn2_g=g2, bn2_b=be2, bn2_m=m2, bn2_v=v2,
        bn3_g=g3, bn3_b=be3, bn3_m=m3, bn3_v=v3,
    )


def _reference_forward(x, params):
    """Pure-JAX reference of the PyTorch forward (eval mode)."""
    eps = 1e-5

    def bn(h, g, b, m, v):
        return (h - m) / jnp.sqrt(v + eps) * g + b

    h1 = jnp.maximum(x @ params["w1"].T + params["b1"], 0.0)
    h1 = bn(h1, params["bn1_g"], params["bn1_b"], params["bn1_m"], params["bn1_v"])
    h2 = jnp.maximum(h1 @ params["w2"].T + params["b2"], 0.0)
    h2 = bn(h2, params["bn2_g"], params["bn2_b"], params["bn2_m"], params["bn2_v"])
    h2 = h2 + h1[:, :64]
    h3 = jnp.maximum(h2 @ params["w3"].T + params["b3"], 0.0)
    h3 = bn(h3, params["bn3_g"], params["bn3_b"], params["bn3_m"], params["bn3_v"])
    h3 = h3 + h2[:, :32]
    return h3 @ params["wo"].T + params["bo"]


if __name__ == "__main__":
    key = jax.random.PRNGKey(0)
    k_x, k_p = jax.random.split(key)

    batch, input_dim = 8, 32
    x = jax.random.normal(k_x, (batch, input_dim), jnp.float32)
    params = init_params(k_p, input_dim)
    ref = _reference_forward(x, params)

    # f32 parameter/activation stream (tight check).
    prep_f32 = prepare_params(params, dtype=jnp.float32)
    out = jax.block_until_ready(neural_network_forward(x, prep_f32))
    assert out.shape == (batch, 1)
    assert jnp.allclose(out, ref, atol=1e-3, rtol=1e-3)

    # bf16 streaming (default; f32 accumulation) — loose check.
    prep_bf16 = prepare_params(params)
    out_bf16 = jax.block_until_ready(neural_network_forward(x, prep_bf16))
    assert out_bf16.shape == (batch, 1)
    assert jnp.allclose(out_bf16, ref, atol=1e-1, rtol=1e-1)

    # Ragged batch (not divisible by the tile size; no wrapper padding).
    x_odd = jax.random.normal(k_x, (37, input_dim), jnp.float32)
    ref_odd = _reference_forward(x_odd, params)
    out_odd = jax.block_until_ready(neural_network_forward(x_odd, prep_f32))
    assert out_odd.shape == (37, 1)
    assert jnp.allclose(out_odd, ref_odd, atol=1e-3, rtol=1e-3)

    print("KERNEL_OK")
</pallas_src>

<mosaic_0001>
module attributes {stable_mosaic.version = 11 : i64} {
  func.func @_mlp_kernel(%arg0: i32, %arg1: memref<8x32xf32, #tpu.memory_space<vmem>>, %arg2: memref<32x128xf32, #tpu.memory_space<vmem>>, %arg3: memref<2x128x128xf32, #tpu.memory_space<vmem>>, %arg4: memref<16x128xf32, #tpu.memory_space<vmem>>, %arg5: memref<8x1xf32, #tpu.memory_space<vmem>>) attributes {dimension_semantics = [#tpu.dimension_semantics<parallel>], iteration_bounds = array<i64: 1>, scalar_prefetch = 0 : i64, scratch_operands = 0 : i64, tpu.core_type = #tpu.core_type<tc>, window_params = [{transform_indices = @transform_0, window_bounds = array<i64: 8, 32>}, {pipeline_mode = #tpu.pipeline_mode<synchronous>, transform_indices = @transform_1, window_bounds = array<i64: 32, 128>}, {pipeline_mode = #tpu.pipeline_mode<synchronous>, transform_indices = @transform_2, window_bounds = array<i64: 2, 128, 128>}, {pipeline_mode = #tpu.pipeline_mode<synchronous>, transform_indices = @transform_3, window_bounds = array<i64: 16, 128>}, {transform_indices = @transform_4, window_bounds = array<i64: 8, 1>}]} {
    %c0 = arith.constant 0 : index
    %c0_0 = arith.constant 0 : index
    %0 = vector.load %arg1[%c0, %c0_0] : memref<8x32xf32, #tpu.memory_space<vmem>>, vector<8x32xf32>
    %c0_1 = arith.constant 0 : index
    %c0_2 = arith.constant 0 : index
    %1 = vector.load %arg4[%c0_1, %c0_2] : memref<16x128xf32, #tpu.memory_space<vmem>>, vector<1x128xf32>
    %c1 = arith.constant 1 : index
    %c0_3 = arith.constant 0 : index
    %2 = vector.load %arg4[%c1, %c0_3] : memref<16x128xf32, #tpu.memory_space<vmem>>, vector<1x128xf32>
    %c2 = arith.constant 2 : index
    %c0_4 = arith.constant 0 : index
    %3 = vector.load %arg4[%c2, %c0_4] : memref<16x128xf32, #tpu.memory_space<vmem>>, vector<1x128xf32>
    %c3 = arith.constant 3 : index
    %c0_5 = arith.constant 0 : index
    %4 = vector.load %arg4[%c3, %c0_5] : memref<16x128xf32, #tpu.memory_space<vmem>>, vector<1x128xf32>
    %c4 = arith.constant 4 : index
    %c0_6 = arith.constant 0 : index
    %5 = vector.load %arg4[%c4, %c0_6] : memref<16x128xf32, #tpu.memory_space<vmem>>, vector<1x128xf32>
    %c5 = arith.constant 5 : index
    %c0_7 = arith.constant 0 : index
    %6 = vector.load %arg4[%c5, %c0_7] : memref<16x128xf32, #tpu.memory_space<vmem>>, vector<1x128xf32>
    %c6 = arith.constant 6 : index
    %c0_8 = arith.constant 0 : index
    %7 = vector.load %arg4[%c6, %c0_8] : memref<16x128xf32, #tpu.memory_space<vmem>>, vector<1x128xf32>
    %c7 = arith.constant 7 : index
    %c0_9 = arith.constant 0 : index
    %8 = vector.load %arg4[%c7, %c0_9] : memref<16x128xf32, #tpu.memory_space<vmem>>, vector<1x128xf32>
    %c8 = arith.constant 8 : index
    %c0_10 = arith.constant 0 : index
    %9 = vector.load %arg4[%c8, %c0_10] : memref<16x128xf32, #tpu.memory_space<vmem>>, vector<1x128xf32>
    %c9 = arith.constant 9 : index
    %c0_11 = arith.constant 0 : index
    %10 = vector.load %arg4[%c9, %c0_11] : memref<16x128xf32, #tpu.memory_space<vmem>>, vector<1x128xf32>
    %c10 = arith.constant 10 : index
    %c0_12 = arith.constant 0 : index
    %11 = vector.load %arg4[%c10, %c0_12] : memref<16x128xf32, #tpu.memory_space<vmem>>, vector<1x128xf32>
    %c11 = arith.constant 11 : index
    %c0_13 = arith.constant 0 : index
    %12 = vector.load %arg4[%c11, %c0_13] : memref<16x128xf32, #tpu.memory_space<vmem>>, vector<1x128xf32>
    %c12 = arith.constant 12 : index
    %c0_14 = arith.constant 0 : index
    %13 = vector.load %arg4[%c12, %c0_14] : memref<16x128xf32, #tpu.memory_space<vmem>>, vector<1x128xf32>
    %c0_15 = arith.constant 0 : index
    %c0_16 = arith.constant 0 : index
    %14 = vector.load %arg2[%c0_15, %c0_16] : memref<32x128xf32, #tpu.memory_space<vmem>>, vector<32x128xf32>
    %cst = arith.constant dense<0.000000e+00> : vector<8x128xf32>
    %15 = tpu.matmul %0, %14, %cst {dimension_numbers = #tpu.dot_dimension_numbers<[1], [0], [0], [1], [0, 0, 1, 1], [], []>} : vector<8x32xf32>, vector<32x128xf32>, vector<8x128xf32> -> vector<8x128xf32>
    %16 = vector.broadcast %1 : vector<1x128xf32> to vector<8x128xf32>
    %17 = arith.addf %15, %16 : vector<8x128xf32>
    %cst_17 = arith.constant 0.000000e+00 : f32
    %18 = vector.broadcast %cst_17 : f32 to vector<8x128xf32>
    %19 = arith.maximumf %17, %18 : vector<8x128xf32>
    %20 = vector.broadcast %2 : vector<1x128xf32> to vector<8x128xf32>
    %21 = arith.mulf %19, %20 : vector<8x128xf32>
    %22 = vector.broadcast %3 : vector<1x128xf32> to vector<8x128xf32>
    %23 = arith.addf %21, %22 : vector<8x128xf32>
    %c0_18 = arith.constant 0 : index
    %c0_19 = arith.constant 0 : index
    %c0_20 = arith.constant 0 : index
    %24 = vector.load %arg3[%c0_18, %c0_19, %c0_20] : memref<2x128x128xf32, #tpu.memory_space<vmem>>, vector<1x128x128xf32>
    %25 = vector.shape_cast %24 : vector<1x128x128xf32> to vector<128x128xf32>
    %cst_21 = arith.constant dense<0.000000e+00> : vector<8x128xf32>
    %26 = tpu.matmul %23, %25, %cst_21 {dimension_numbers = #tpu.dot_dimension_numbers<[1], [0], [0], [1], [0, 0, 1, 1], [], []>} : vector<8x128xf32>, vector<128x128xf32>, vector<8x128xf32> -> vector<8x128xf32>
    %27 = vector.broadcast %4 : vector<1x128xf32> to vector<8x128xf32>
    %28 = arith.addf %26, %27 : vector<8x128xf32>
    %cst_22 = arith.constant 0.000000e+00 : f32
    %29 = vector.broadcast %cst_22 : f32 to vector<8x128xf32>
    %30 = arith.maximumf %28, %29 : vector<8x128xf32>
    %31 = vector.broadcast %5 : vector<1x128xf32> to vector<8x128xf32>
    %32 = arith.mulf %30, %31 : vector<8x128xf32>
    %33 = vector.broadcast %6 : vector<1x128xf32> to vector<8x128xf32>
    %34 = arith.addf %32, %33 : vector<8x128xf32>
    %35 = vector.broadcast %12 : vector<1x128xf32> to vector<8x128xf32>
    %36 = arith.mulf %23, %35 : vector<8x128xf32>
    %37 = arith.addf %34, %36 : vector<8x128xf32>
    %c1_23 = arith.constant 1 : index
    %c0_24 = arith.constant 0 : index
    %c0_25 = arith.constant 0 : index
    %38 = vector.load %arg3[%c1_23, %c0_24, %c0_25] : memref<2x128x128xf32, #tpu.memory_space<vmem>>, vector<1x128x128xf32>
    %39 = vector.shape_cast %38 : vector<1x128x128xf32> to vector<128x128xf32>
    %cst_26 = arith.constant dense<0.000000e+00> : vector<8x128xf32>
    %40 = tpu.matmul %37, %39, %cst_26 {dimension_numbers = #tpu.dot_dimension_numbers<[1], [0], [0], [1], [0, 0, 1, 1], [], []>} : vector<8x128xf32>, vector<128x128xf32>, vector<8x128xf32> -> vector<8x128xf32>
    %41 = vector.broadcast %7 : vector<1x128xf32> to vector<8x128xf32>
    %42 = arith.addf %40, %41 : vector<8x128xf32>
    %cst_27 = arith.constant 0.000000e+00 : f32
    %43 = vector.broadcast %cst_27 : f32 to vector<8x128xf32>
    %44 = arith.maximumf %42, %43 : vector<8x128xf32>
    %45 = vector.broadcast %8 : vector<1x128xf32> to vector<8x128xf32>
    %46 = arith.mulf %44, %45 : vector<8x128xf32>
    %47 = vector.broadcast %9 : vector<1x128xf32> to vector<8x128xf32>
    %48 = arith.addf %46, %47 : vector<8x128xf32>
    %49 = vector.broadcast %13 : vector<1x128xf32> to vector<8x128xf32>
    %50 = arith.mulf %37, %49 : vector<8x128xf32>
    %51 = arith.addf %48, %50 : vector<8x128xf32>
    %52 = vector.broadcast %10 : vector<1x128xf32> to vector<8x128xf32>
    %53 = arith.mulf %51, %52 : vector<8x128xf32>
    %54 = vector.broadcast %11 : vector<1x128xf32> to vector<8x128xf32>
    %55 = arith.addf %53, %54 : vector<8x128xf32>
    %cst_28 = arith.constant dense<0.000000e+00> : vector<8xf32>
    %56 = vector.multi_reduction <add>, %55, %cst_28 [1] : vector<8x128xf32> to vector<8xf32>
    %57 = vector.shape_cast %56 : vector<8xf32> to vector<8x1xf32>
    %c0_29 = arith.constant 0 : index
    %c0_30 = arith.constant 0 : index
    %58 = vector.load %arg5[%c0_29, %c0_30] : memref<8x1xf32, #tpu.memory_space<vmem>>, vector<8x1xf32>
    tpu.vector_store %arg5[%c0_29, %c0_30], %57 {strides = array<i32>} : memref<8x1xf32, #tpu.memory_space<vmem>>, vector<8x1xf32>,
    return
  }
  func.func @transform_0(%arg0: i32) -> (i32, i32) {
    %c0_i32 = arith.constant 0 : i32
    %c0_i32_0 = arith.constant 0 : i32
    return %arg0, %c0_i32 : i32, i32
  }
  func.func @transform_1(%arg0: i32) -> (i32, i32) {
    %c0_i32 = arith.constant 0 : i32
    %c0_i32_0 = arith.constant 0 : i32
    %c0_i32_1 = arith.constant 0 : i32
    return %c0_i32, %c0_i32_0 : i32, i32
  }
  func.func @transform_2(%arg0: i32) -> (i32, i32, i32) {
    %c0_i32 = arith.constant 0 : i32
    %c0_i32_0 = arith.constant 0 : i32
    %c0_i32_1 = arith.constant 0 : i32
    %c0_i32_2 = arith.constant 0 : i32
    return %c0_i32, %c0_i32_0, %c0_i32_1 : i32, i32, i32
  }
  func.func @transform_3(%arg0: i32) -> (i32, i32) {
    %c0_i32 = arith.constant 0 : i32
    %c0_i32_0 = arith.constant 0 : i32
    %c0_i32_1 = arith.constant 0 : i32
    return %c0_i32, %c0_i32_0 : i32, i32
  }
  func.func @transform_4(%arg0: i32) -> (i32, i32) {
    %c0_i32 = arith.constant 0 : i32
    %c0_i32_0 = arith.constant 0 : i32
    return %arg0, %c0_i32 : i32, i32
  }
}

</mosaic_0001>

<bundles_post_ra>
// kernel: neural_network_forward.1
= control target key start
LH: loop header
LB: loop body
LE: loop exit
PB: predicated region body
PF: predicated region fallthrough
CT: control target
= control target key end

     0   :  { %9 = vsyncpa [#allocation3], 0  ;;  %s819_s0 = inlined_call_operand.hbm [shape: f32[8,32], index: 0, kind: input, shape index: {}]   ;;  %s820_s1 = inlined_call_operand.hbm [shape: f32[32,128], index: 1, kind: input, shape index: {}]   ;;  %s821_s2 = inlined_call_operand.hbm [shape: f32[2,128,128], index: 2, kind: input, shape index: {}]   ;;  %s822_s3 = inlined_call_operand.hbm [shape: f32[16,128], index: 3, kind: input, shape index: {}]   ;;  %s823_s4 = inlined_call_operand.vmem [shape: f32[8,1], index: 4, kind: output, shape index: {}]  }
   0x1   :  { %10 = vsyncpa [#allocation5], 0 }
   0x2   :  { %11 = vsyncpa [#allocation8], 0  ;;  %s704_s15 = smov [#allocation4]   ;;  %s610_s19 = scalar_lea.hbm %s820_s1, 512 }
   0x3   :  { %s27_s16 = sshll.u32 %s704_s15, 4  ;;  %p611_p0 = scmp.ne.s32.totalorder %s820_s1, %s610_s19  ;;  %s28_s16 = int_to_ptr.vmem [resolvable:$true] %s27_s16 }
   0x4   :  { %p614_p1 = scmp.lt.u32.totalorder %s610_s19, %s820_s1 }
   0x6   :  { %p616_p2 = pnand %p614_p1, %p611_p0 }
   0x8   :  { %619 = shalt.err (!%p616_p2)
}
   0x9   :  { %s620_s24 = scalar_lea.vmem %s28_s16, 512  ;;  %p625_p4 = scmp.lt.s32.totalorder %s28_s16, %s28_s16 }
   0xa   :  { %p621_p3 = scmp.ne.s32.totalorder %s28_s16, %s620_s24  ;;  %p626_p5 = scmp.lt.s32.totalorder %s620_s24, %s620_s24 }
   0xc   :  { %p627_p6 = por %p626_p5, %p625_p4 }
   0xe   :  { %p628_p7 = pnand %p627_p6, %p621_p3 }
  0x10   :  { %631 = shalt.err (!%p628_p7)
}
  0x11   :  { %s705_s25 = smov 128   ;;  %s706_s26 = smov 8  }
  0x12   :  { %33 = dma.hbm_to_vmem [thread:$0]  %s820_s1, 512, %s28_s16, [#allocation5], %s705_s25, %s705_s25, %s706_s26  }
  0x13   :  { %s707_s29 = smov [#allocation2]   ;;  %s708_s5 = smov [#allocation6]  }
  0x14   :  { %s18_s30 = sshll.u32 %s707_s29, 4  ;;  %s39_s6 = sshll.u32 %s708_s5, 4  ;;  %s19_s30 = int_to_ptr.vmem [resolvable:$true] %s18_s30  ;;  %s40_s6 = int_to_ptr.vmem [resolvable:$true] %s39_s6 }
  0x15   :  { %s632_s9 = scalar_lea.hbm %s819_s0, 128 }
  0x16   :  { %p633_p8 = scmp.ne.s32.totalorder %s819_s0, %s632_s9  ;;  %p636_p9 = scmp.lt.u32.totalorder %s632_s9, %s819_s0 }
  0x18   :  { %p638_p10 = pnand %p636_p9, %p633_p8 }
  0x1a   :  { %641 = shalt.err (!%p638_p10)
}
  0x1b   :  { %s642_s1 = scalar_lea.vmem %s19_s30, 128  ;;  %p647_p12 = scmp.lt.s32.totalorder %s19_s30, %s19_s30 }
  0x1c   :  { %p643_p11 = scmp.ne.s32.totalorder %s19_s30, %s642_s1  ;;  %p648_p13 = scmp.lt.s32.totalorder %s642_s1, %s642_s1 }
  0x1e   :  { %p649_p0 = por %p648_p13, %p647_p12 }
  0x20   :  { %p650_p1 = pnand %p649_p0, %p643_p11 }
  0x22   :  { %653 = shalt.err (!%p650_p1)
}
  0x23   :  { %21 = dma.hbm_to_vmem [thread:$0]  %s819_s0, 128, %s19_s30, [#allocation3]  }
  0x24   :  { %s654_s18 = scalar_lea.hbm %s821_s2, 4096 }
  0x25   :  { %p655_p2 = scmp.ne.s32.totalorder %s821_s2, %s654_s18  ;;  %p658_p3 = scmp.lt.u32.totalorder %s654_s18, %s821_s2 }
  0x27   :  { %p660_p4 = pnand %p658_p3, %p655_p2 }
  0x29   :  { %663 = shalt.err (!%p660_p4)
}
  0x2a   :  { %s664_s23 = scalar_lea.vmem %s40_s6, 4096  ;;  %p669_p6 = scmp.lt.s32.totalorder %s40_s6, %s40_s6 }
  0x2b   :  { %p665_p5 = scmp.ne.s32.totalorder %s40_s6, %s664_s23  ;;  %p670_p7 = scmp.lt.s32.totalorder %s664_s23, %s664_s23 }
  0x2d   :  { %p671_p8 = por %p670_p7, %p669_p6 }
  0x2f   :  { %p672_p9 = pnand %p671_p8, %p665_p5 }
  0x31   :  { %675 = shalt.err (!%p672_p9)
}
  0x32   :  { %45 = dma.hbm_to_vmem [thread:$0]  %s821_s2, 4096, %s40_s6, [#allocation5], %s705_s25, %s705_s25, %s706_s26  }
  0x33   :  { %s709_s27 = smov [#allocation7]   ;;  %s676_s5 = scalar_lea.hbm %s822_s3, 256 }
  0x34   :  { %s51_s28 = sshll.u32 %s709_s27, 4  ;;  %p677_p10 = scmp.ne.s32.totalorder %s822_s3, %s676_s5  ;;  %s52_s28 = int_to_ptr.vmem [resolvable:$true] %s51_s28 }
  0x35   :  { %p680_p11 = scmp.lt.u32.totalorder %s676_s5, %s822_s3 }
  0x37   :  { %p682_p12 = pnand %p680_p11, %p677_p10 }
  0x39   :  { %685 = shalt.err (!%p682_p12)
}
  0x3a   :  { %s686_s11 = scalar_lea.vmem %s52_s28, 256  ;;  %p691_p0 = scmp.lt.s32.totalorder %s52_s28, %s52_s28 }
  0x3b   :  { %p687_p13 = scmp.ne.s32.totalorder %s52_s28, %s686_s11  ;;  %p692_p1 = scmp.lt.s32.totalorder %s686_s11, %s686_s11 }
  0x3d   :  { %p693_p2 = por %p692_p1, %p691_p0 }
  0x3f   :  { %p694_p3 = pnand %p693_p2, %p687_p13 }
  0x41   :  { %697 = shalt.err (!%p694_p3)
}
  0x42   :  { %57 = dma.hbm_to_vmem [thread:$0]  %s822_s3, 256, %s52_s28, [#allocation8], %s705_s25, %s705_s25, %s706_s26  }
  0x43   :  { %698 = dma.done.wait [#allocation3], 128  }
  0x44   :  { %699 = vsyncadd [#allocation3], 4294967168 }
  0x45   :  { %700 = dma.done.wait [#allocation5], 4608  }
  0x46   :  { %701 = vsyncadd [#allocation5], 4294962688 }
  0x47   :  { %702 = dma.done.wait [#allocation8], 256  }
  0x48   :  { %703 = vsyncadd [#allocation8], 4294967040  ;;  %v710_v0 = vmov 0.0|0.0   ;;  %vm711_vm0 = vmmov 0   ;;  %v712_v1 = vmov 0.0   ;;  %v84_v2 = vld [vmem:[#allocation4] sm:$0xff] }
  0x49   :  { %547 = vmatprep.subr.bf16.mxu0 %v710_v0  ;;  %474 = vmatprep.mubr.msk.f32.mxu0 %vm711_vm0, %v712_v1  ;;  %v85_v3 = vld [vmem:[#allocation4 + $0x8] sm:$0xff]  ;;  %v86_v4 = vld [vmem:[#allocation4 + $0x10] sm:$0xff]  ;;  %v87_v6 = vld [vmem:[#allocation4 + $0x18] sm:$0xff]  ;;  %vm92_vm1 = vcmask 261120   ;;  %vm404_vm2 = vcmask 7168  }
  0x4a   :  { %553 = vmatprep.subr.bf16.mxu1 %v710_v0  ;;  %509 = vmatprep.mubr.msk.f32.mxu1 %vm711_vm0, %v712_v1  ;;  %v548_v5 = vpack.c.bf16 %v85_v3, %v84_v2  ;;  %v177_v7 = vld [vmem:[#allocation6] sm:$0xff]  ;;  %v178_v8 = vld [vmem:[#allocation6 + $0x8] sm:$0xff]  ;;  %v179_v9 = vld [vmem:[#allocation6 + $0x10] sm:$0xff]  ;;  %v551_v11 = vpack.c.bf16 %v87_v6, %v86_v4 }
  0x4b   :  { %v180_v10 = vld [vmem:[#allocation6 + $0x18] sm:$0xff]  ;;  %v554_v12 = vpack.c.bf16 %v178_v8, %v177_v7  ;;  %v181_v14 = vld [vmem:[#allocation6 + $0x20] sm:$0xff]  ;;  %v182_v15 = vld [vmem:[#allocation6 + $0x28] sm:$0xff] }
  0x4c   :  { %549 = vmatpush3.bf16.msra.mxu0 %v548_v5  ;;  %v557_v13 = vpack.c.bf16 %v180_v10, %v179_v9  ;;  %v70_v16 = vld [vmem:[#allocation2] sm:$0xff]  ;;  %v560_v17 = vpack.c.bf16 %v182_v15, %v181_v14  ;;  %v183_v18 = vld [vmem:[#allocation6 + $0x30] sm:$0xff]  ;;  %v185_v21 = vld [vmem:[#allocation6 + $0x40] sm:$0xff] }
  0x4d   :  { %550 = vmatprep.subr.bf16.mxu0 %v710_v0  ;;  %555 = vmatpush3.bf16.msra.mxu1 %v554_v12  ;;  %v184_v19 = vld [vmem:[#allocation6 + $0x38] sm:$0xff]  ;;  %v186_v22 = vld [vmem:[#allocation6 + $0x48] sm:$0xff]  ;;  %v187_v24 = vld [vmem:[#allocation6 + $0x50] sm:$0xff] }
  0x4e   :  { %556 = vmatprep.subr.bf16.mxu1 %v710_v0  ;;  %v563_v20 = vpack.c.bf16 %v184_v19, %v183_v18  ;;  %v566_v23 = vpack.c.bf16 %v186_v22, %v185_v21  ;;  %v188_v25 = vld [vmem:[#allocation6 + $0x58] sm:$0xff]  ;;  %v189_v27 = vld [vmem:[#allocation6 + $0x60] sm:$0xff]  ;;  %v190_v28 = vld [vmem:[#allocation6 + $0x68] sm:$0xff] }
  0x4f   :  { %v569_v26 = vpack.c.bf16 %v188_v25, %v187_v24  ;;  %v572_v29 = vpack.c.bf16 %v190_v28, %v189_v27  ;;  %v191_v30 = vld [vmem:[#allocation6 + $0x70] sm:$0xff]  ;;  %v192_v31 = vld [vmem:[#allocation6 + $0x78] sm:$0xff]  ;;  %v285_v33 = vld [vmem:[#allocation6 + $0x80] sm:$0xff] }
  0x50   :  { %552 = vmatpush3.bf16.msra.mxu0 %v551_v11  ;;  %v575_v32 = vpack.c.bf16 %v192_v31, %v191_v30  ;;  %v286_v34 = vld [vmem:[#allocation6 + $0x88] sm:$0xff]  ;;  %v287_v35 = vld [vmem:[#allocation6 + $0x90] sm:$0xff]  ;;  %v288_v37 = vld [vmem:[#allocation6 + $0x98] sm:$0xff] }
  0x51   :  { %577 = vmatprep.subr.bf16.mxu0 %v710_v0  ;;  %558 = vmatpush3.bf16.msra.mxu1 %v557_v13  ;;  %v578_v36 = vpack.c.bf16 %v286_v34, %v285_v33  ;;  %v581_v38 = vpack.c.bf16 %v288_v37, %v287_v35  ;;  %v289_v39 = vld [vmem:[#allocation6 + $0xa0] sm:$0xff]  ;;  %v290_v40 = vld [vmem:[#allocation6 + $0xa8] sm:$0xff]  ;;  %v291_v42 = vld [vmem:[#allocation6 + $0xb0] sm:$0xff] }
  0x52   :  { %559 = vmatprep.subr.bf16.mxu1 %v710_v0  ;;  %v584_v41 = vpack.c.bf16 %v290_v40, %v289_v39  ;;  %v292_v43 = vld [vmem:[#allocation6 + $0xb8] sm:$0xff]  ;;  %v293_v45 = vld [vmem:[#allocation6 + $0xc0] sm:$0xff]  ;;  %v294_v46 = vld [vmem:[#allocation6 + $0xc8] sm:$0xff] }
  0x53   :  { %475 = vmatmul.mubr.msk.f32.vlgmr.msra.gmra.mrb[0].mxu0 %vm92_vm1, %v70_v16  ;;  %v587_v44 = vpack.c.bf16 %v292_v43, %v291_v42  ;;  %v590_v47 = vpack.c.bf16 %v294_v46, %v293_v45  ;;  %v413_v48 = vld [vmem:[#allocation7] ss:$0 sm:$0xff]  ;;  %v415_v52 = vld [vmem:[#allocation7 + $0x1] ss:$0 sm:$0xff]  ;;  %v416_v54 = vld [vmem:[#allocation7 + $0x2] ss:$0 sm:$0xff] }
  0x54   :  { %544 = vmatprep.mubr.msk.f32.mxu0 %vm711_vm0, %v712_v1  ;;  %579 = vmatpush3.bf16.msra.mxu0 %v578_v36  ;;  %v295_v57 = vld [vmem:[#allocation6 + $0xd0] sm:$0xff]  ;;  %v296_v58 = vld [vmem:[#allocation6 + $0xd8] sm:$0xff]  ;;  %v297_v60 = vld [vmem:[#allocation6 + $0xe0] sm:$0xff] }
  0x55   :  { %561 = vmatpush3.bf16.msra.mxu1 %v560_v17  ;;  %580 = vmatprep.subr.bf16.mxu0 %v710_v0  ;;  %v593_v59 = vpack.c.bf16 %v296_v58, %v295_v57  ;;  %v298_v61 = vld [vmem:[#allocation6 + $0xe8] sm:$0xff]  ;;  %v299_v63 = vld [vmem:[#allocation6 + $0xf0] sm:$0xff]  ;;  %v300_v1 = vld [vmem:[#allocation6 + $0xf8] sm:$0xff] }
  0x56   :  { %562 = vmatprep.subr.bf16.mxu1 %v710_v0  ;;  %v596_v62 = vpack.c.bf16 %v298_v61, %v297_v60  ;;  %v599_v2 = vpack.c.bf16 %v300_v1, %v299_v63  ;;  %v417_v3 = vld [vmem:[#allocation7 + $0x3] ss:$0 sm:$0xff]  ;;  %v418_v7 = vld [vmem:[#allocation7 + $0x4] ss:$0 sm:$0xff]  ;;  %v420_v9 = vld [vmem:[#allocation7 + $0xb] ss:$0 sm:$0xff] }
  0x57   :  { %v419_v10 = vld [vmem:[#allocation7 + $0x5] ss:$0 sm:$0xff]  ;;  %v421_v15 = vld [vmem:[#allocation7 + $0x6] ss:$0 sm:$0xff]  ;;  %v422_v18 = vld [vmem:[#allocation7 + $0x7] ss:$0 sm:$0xff] }
  0x58   :  { %582 = vmatpush3.bf16.msra.mxu0 %v581_v38  ;;  %v424_v21 = vld [vmem:[#allocation7 + $0xc] ss:$0 sm:$0xff]  ;;  %v425_v25 = vld [vmem:[#allocation7 + $0x9] ss:$0 sm:$0xff]  ;;  %v426_v27 = vld [vmem:[#allocation7 + $0xa] ss:$0 sm:$0xff] }
  0x59   :  { %564 = vmatpush3.bf16.msra.mxu1 %v563_v20  ;;  %583 = vmatprep.subr.bf16.mxu0 %v710_v0  ;;  %v423_v20 = vld [vmem:[#allocation7 + $0x8] ss:$0 sm:$0xff] }
  0x5a   :  { %565 = vmatprep.subr.bf16.mxu1 %v710_v0 }
  0x5c   :  { %585 = vmatpush3.bf16.msra.mxu0 %v584_v41 }
  0x5d   :  { %567 = vmatpush3.bf16.msra.mxu1 %v566_v23  ;;  %586 = vmatprep.subr.bf16.mxu0 %v710_v0 }
  0x5e   :  { %568 = vmatprep.subr.bf16.mxu1 %v710_v0 }
  0x60   :  { %588 = vmatpush3.bf16.msra.mxu0 %v587_v44 }
  0x61   :  { %570 = vmatpush3.bf16.msra.mxu1 %v569_v26  ;;  %589 = vmatprep.subr.bf16.mxu0 %v710_v0 }
  0x62   :  { %571 = vmatprep.subr.bf16.mxu1 %v710_v0 }
  0x64   :  { %591 = vmatpush3.bf16.msra.mxu0 %v590_v47 }
  0x65   :  { %573 = vmatpush3.bf16.msra.mxu1 %v572_v29  ;;  %592 = vmatprep.subr.bf16.mxu0 %v710_v0 }
  0x66   :  { %574 = vmatprep.subr.bf16.mxu1 %v710_v0 }
  0x68   :  { %594 = vmatpush3.bf16.msra.mxu0 %v593_v59 }
  0x69   :  { %576 = vmatpush3.bf16.msra.mxu1 %v575_v32  ;;  %595 = vmatprep.subr.bf16.mxu0 %v710_v0 }
  0x6c   :  { %597 = vmatpush3.bf16.msra.mxu0 %v596_v62 }
  0x6d   :  { %598 = vmatprep.subr.bf16.mxu0 %v710_v0 }
  0x70   :  { %600 = vmatpush3.bf16.msra.mxu0 %v599_v2 }
 0x126   :  { %v162_v49 = vpop.f32.mrb[0].mxu0 }
 0x127   :  { %v163_v50 = vadd.f32 %v413_v48, %v162_v49  ;;  %v476_v51 = vpop.f32.mrb[1].mxu0 }
 0x129   :  { %v166_v53 = vmax.f32 %v163_v50, 0.0 }
 0x12b   :  { %v171_v55 = vmul.f32 %v415_v52, %v166_v53 }
 0x12d   :  { %v176_v56 = vadd.f32 %v416_v54, %v171_v55 }
 0x12f   :  { %510 = vmatmul.mubr.f32.vlgmr.msra.gmra.mrb[0].mxu1 %v176_v56  ;;  %v282_v12 = vmul.f32 %v420_v9, %v176_v56 }
 0x202   :  { %v263_v4 = vpop.f32.mrb[0].mxu1 }
 0x203   :  { %v264_v5 = vadd.f32 %v417_v3, %v263_v4  ;;  %v511_v6 = vpop.f32.mrb[1].mxu1 }
 0x205   :  { %v267_v8 = vmax.f32 %v264_v5, 0.0 }
 0x207   :  { %v272_v11 = vmul.f32 %v418_v7, %v267_v8 }
 0x209   :  { %v277_v13 = vadd.f32 %v419_v10, %v272_v11 }
 0x20b   :  { %v283_v14 = vadd.f32 %v282_v12, %v277_v13 }
 0x20d   :  { %545 = vmatmul.mubr.f32.vlgmr.msra.gmra.mrb[2].mxu0 %v283_v14  ;;  %v390_v24 = vmul.f32 %v424_v21, %v283_v14 }
 0x2e0   :  { %v371_v16 = vpop.f32.mrb[2].mxu0 }
 0x2e1   :  { %v372_v0 = vadd.f32 %v421_v15, %v371_v16  ;;  %v546_v17 = vpop.f32.mrb[3].mxu0 }
 0x2e3   :  { %v375_v19 = vmax.f32 %v372_v0, 0.0 }
 0x2e5   :  { %v380_v22 = vmul.f32 %v422_v18, %v375_v19 }
 0x2e7   :  { %v385_v23 = vadd.f32 %v423_v20, %v380_v22 }
 0x2e9   :  { %v391_v26 = vadd.f32 %v390_v24, %v385_v23 }
 0x2eb   :  { %v396_v28 = vmul.f32 %v425_v25, %v391_v26 }
 0x2ed   :  { %v401_v29 = vadd.f32 %v426_v27, %v396_v28 }
 0x2ef   :  { %402 = vadd.xlane.f32.xlu0 %v401_v29 }
 0x37c   :  { %v403_v30 = vpop.xlane.xlu0 %402 }
 0x37d   :  { %405 = vst.msk [vmem:[%s823_s4] sm:$0xff] %vm404_vm2, %v403_v30 }
 0x37e   :  { %410 = vsyncpa [#allocation3], 1 }
 0x37f   :  { %411 = vsyncpa [#allocation5], 1 }
 0x380   :  { %412 = vsyncpa [#allocation8], 1 }

</bundles_post_ra>
